<compile_context>
chip_gen: v5e
topology: v5e:2x2
jax: 0.10.0
libtpu: 0.0.40
codegen_flags: <defaults>
</compile_context>

<pallas_src>
import numpy as np
import jax
import jax.numpy as jnp
from jax.experimental import pallas as pl
from jax.experimental.pallas import tpu as pltpu


def _sublane_align(dtype):
    itemsize = jnp.dtype(dtype).itemsize
    if itemsize >= 4:
        return 8
    if itemsize == 2:
        return 16
    return 32


def _round_up(a, b):
    return pl.cdiv(a, b) * b


def _plan_layout(total, itemsize, sub_align, target_tile_bytes):
    """Pick a lane-dense (rows_padded, lane) view and a row tile `tr`."""
    lane = 2048
    while lane > 128 and lane > total:
        lane //= 2
    rows = pl.cdiv(total, lane)
    bytes_per_row = lane * itemsize
    # number of row blocks so each per-input tile stays ~= target_tile_bytes
    grid_r = max(1, pl.cdiv(rows * bytes_per_row, target_tile_bytes))
    tr = _round_up(pl.cdiv(rows, grid_r), sub_align)
    grid_r = pl.cdiv(rows, tr)
    rows_padded = grid_r * tr
    return lane, tr, grid_r, rows_padded


def _sq_diff_partial_kernel(x_ref, r_ref, out_ref):
    d = x_ref[...].astype(jnp.float32) - r_ref[...].astype(jnp.float32)
    # sublane reduce only (mostly VPU vreg adds); result is a lane-dense row.
    out_ref[...] = jnp.sum(d * d, axis=0, keepdims=True)


def reconstructive_loss(x_in, reconstruct_x, *, target_tile_bytes=4 * 1024 * 1024):
    B = x_in.shape[0]
    x = x_in.reshape(B, -1)
    r = reconstruct_x.reshape(B, -1)
    assert x.shape == r.shape, (x.shape, r.shape)

    total = x.size                      # true element count (for the mean)
    inv_count = 1.0 / float(total)

    itemsize = max(jnp.dtype(x.dtype).itemsize, jnp.dtype(r.dtype).itemsize)
    sub_align = max(_sublane_align(x.dtype), _sublane_align(r.dtype))
    lane, tr, grid_r, rows_padded = _plan_layout(
        total, itemsize, sub_align, target_tile_bytes)
    padded = rows_padded * lane

    def _prep(a):
        flat = a.reshape(-1)
        if padded != total:
            # zero pad both operands identically -> (0-0)^2 adds nothing.
            flat = jnp.pad(flat, (0, padded - total))
        return flat.reshape(rows_padded, lane)

    xp = _prep(x)
    rp = _prep(r)

    in_tile_bytes = tr * lane * (jnp.dtype(xp.dtype).itemsize
                                 + jnp.dtype(rp.dtype).itemsize)
    out_tile_bytes = lane * 4
    vmem_need = 2 * (in_tile_bytes + out_tile_bytes)          # double buffered
    vmem_limit = int(min(max(vmem_need + (2 << 20), 16 << 20), 48 << 20))

    bytes_accessed = (xp.size * jnp.dtype(xp.dtype).itemsize
                      + rp.size * jnp.dtype(rp.dtype).itemsize
                      + grid_r * lane * 4)

    partials = pl.pallas_call(
        _sq_diff_partial_kernel,
        out_shape=jax.ShapeDtypeStruct((1, grid_r * lane), jnp.float32),
        grid=(grid_r,),
        in_specs=[pl.BlockSpec((tr, lane), lambda i: (i, 0)),
                  pl.BlockSpec((tr, lane), lambda i: (i, 0))],
        out_specs=pl.BlockSpec((1, lane), lambda i: (0, i)),
        compiler_params=pltpu.CompilerParams(
            dimension_semantics=("parallel",),
            vmem_limit_bytes=vmem_limit),
        cost_estimate=pl.CostEstimate(
            flops=3 * padded, transcendentals=0, bytes_accessed=bytes_accessed),
    )(xp, rp)

    # tiny final reduction + precomputed 1/(B*N) scale outside the kernel
    return jnp.sum(partials, dtype=jnp.float32) * jnp.float32(inv_count)


# ---------------- numpy reference mirroring the PyTorch module ----------------
def _reference(x_in, reconstruct_x):
    x = np.asarray(x_in, np.float32).reshape(x_in.shape[0], -1)
    r = np.asarray(reconstruct_x, np.float32).reshape(x.shape)
    return np.mean((x - r) ** 2)


if __name__ == "__main__":
    key = jax.random.PRNGKey(0)
    k1, k2, k3, k4, k5, k6 = jax.random.split(key, 6)

    # --- small shape implied by the module: (B, C, H, W) = (2, 4, 16, 16) ---
    x_in = jax.random.normal(k1, (2, 4, 16, 16), dtype=jnp.float32)
    reconstruct_x = jax.random.normal(k2, (2, 4 * 16 * 16), dtype=jnp.float32)

    loss = reconstructive_loss(x_in, reconstruct_x)
    jax.block_until_ready(loss)
    ref = _reference(x_in, reconstruct_x)
    assert abs(float(loss) - float(ref)) < 1e-5, (float(loss), float(ref))

    # --- larger case exercising multiple grid steps / parallel partials ---
    x2 = jax.random.normal(k3, (16, 8, 32, 32), dtype=jnp.float32)
    r2 = jax.random.normal(k4, (16, 8 * 32 * 32), dtype=jnp.float32)
    loss2 = reconstructive_loss(x2, r2)
    jax.block_until_ready(loss2)
    ref2 = _reference(x2, r2)
    assert abs(float(loss2) - float(ref2)) < 1e-5, (float(loss2), float(ref2))

    # --- bf16 inputs (dtype-aware tiling; half the HBM traffic) ---
    x3 = jax.random.normal(k5, (4, 4, 32, 32), dtype=jnp.float32).astype(jnp.bfloat16)
    r3 = jax.random.normal(k6, (4, 4 * 32 * 32), dtype=jnp.float32).astype(jnp.bfloat16)
    loss3 = reconstructive_loss(x3, r3)
    jax.block_until_ready(loss3)
    ref3 = _reference(x3, r3)
    assert abs(float(loss3) - float(ref3)) < 1e-3 * max(1.0, abs(float(ref3))), (
        float(loss3), float(ref3))

    print("KERNEL_OK")
</pallas_src>

<mosaic_0001>
module attributes {stable_mosaic.version = 11 : i64} {
  func.func @_sq_diff_partial_kernel(%arg0: i32, %arg1: memref<8x2048xf32, #tpu.memory_space<vmem>>, %arg2: memref<8x2048xf32, #tpu.memory_space<vmem>>, %arg3: memref<1x2048xf32, #tpu.memory_space<vmem>>) attributes {dimension_semantics = [#tpu.dimension_semantics<parallel>], iteration_bounds = array<i64: 1>, scalar_prefetch = 0 : i64, scratch_operands = 0 : i64, tpu.core_type = #tpu.core_type<tc>, window_params = [{transform_indices = @transform_0, window_bounds = array<i64: 8, 2048>}, {transform_indices = @transform_1, window_bounds = array<i64: 8, 2048>}, {transform_indices = @transform_2, window_bounds = array<i64: 1, 2048>}]} {
    %c0 = arith.constant 0 : index
    %c0_0 = arith.constant 0 : index
    %0 = vector.load %arg1[%c0, %c0_0] : memref<8x2048xf32, #tpu.memory_space<vmem>>, vector<8x2048xf32>
    %c0_1 = arith.constant 0 : index
    %c0_2 = arith.constant 0 : index
    %1 = vector.load %arg2[%c0_1, %c0_2] : memref<8x2048xf32, #tpu.memory_space<vmem>>, vector<8x2048xf32>
    %2 = arith.subf %0, %1 : vector<8x2048xf32>
    %3 = arith.mulf %2, %2 : vector<8x2048xf32>
    %cst = arith.constant dense<0.000000e+00> : vector<2048xf32>
    %4 = vector.multi_reduction <add>, %3, %cst [0] : vector<8x2048xf32> to vector<2048xf32>
    %5 = vector.shape_cast %4 : vector<2048xf32> to vector<1x2048xf32>
    %c0_3 = arith.constant 0 : index
    %c0_4 = arith.constant 0 : index
    %6 = vector.load %arg3[%c0_3, %c0_4] : memref<1x2048xf32, #tpu.memory_space<vmem>>, vector<1x2048xf32>
    tpu.vector_store %arg3[%c0_3, %c0_4], %5 {strides = array<i32>} : memref<1x2048xf32, #tpu.memory_space<vmem>>, vector<1x2048xf32>,
    return
  }
  func.func @transform_0(%arg0: i32) -> (i32, i32) {
    %c0_i32 = arith.constant 0 : i32
    %c0_i32_0 = arith.constant 0 : i32
    return %arg0, %c0_i32 : i32, i32
  }
  func.func @transform_1(%arg0: i32) -> (i32, i32) {
    %c0_i32 = arith.constant 0 : i32
    %c0_i32_0 = arith.constant 0 : i32
    return %arg0, %c0_i32 : i32, i32
  }
  func.func @transform_2(%arg0: i32) -> (i32, i32) {
    %c0_i32 = arith.constant 0 : i32
    %c0_i32_0 = arith.constant 0 : i32
    return %c0_i32, %arg0 : i32, i32
  }
}

</mosaic_0001>

<bundles_post_ra>
// kernel: tpu_custom_call.1
= control target key start
LH: loop header
LB: loop body
LE: loop exit
PB: predicated region body
PF: predicated region fallthrough
CT: control target
= control target key end

     0   :  { %7 = vsyncpa [#allocation3], 0  ;;  %s395_s0 = inlined_call_operand.hbm [shape: f32[8,2048], index: 0, kind: input, shape index: {}]   ;;  %s396_s1 = inlined_call_operand.hbm [shape: f32[8,2048], index: 1, kind: input, shape index: {}]   ;;  %s397_s2 = inlined_call_operand.hbm [shape: f32[1,2048], index: 2, kind: output, shape index: {}]  }
   0x1   :  { %8 = vsyncpa [#allocation6], 0 }
   0x2   :  { %9 = vsyncpa [#allocation4], 0  ;;  %s15_s11 = sshll.u32 %s395_s0, 4  ;;  %s354_s12 = smov [#allocation2]   ;;  %s16_s11 = int_to_ptr.hbm [resolvable:$true] %s15_s11 }
   0x3   :  { %s17_s13 = sshll.u32 %s354_s12, 4  ;;  %s26_s16 = sshll.u32 %s396_s1, 4  ;;  %s18_s13 = int_to_ptr.vmem [resolvable:$true] %s17_s13  ;;  %s27_s16 = int_to_ptr.hbm [resolvable:$true] %s26_s16 }
   0x4   :  { %20 = dma.hbm_to_vmem [thread:$0]  %s16_s11, 2048, %s18_s13, [#allocation3]  }
   0x5   :  { %s355_s17 = smov [#allocation5]  }
   0x6   :  { %s28_s18 = sshll.u32 %s355_s17, 4  ;;  %s29_s18 = int_to_ptr.vmem [resolvable:$true] %s28_s18 }
   0x7   :  { %31 = dma.hbm_to_vmem [thread:$0]  %s27_s16, 2048, %s29_s18, [#allocation6]  }
   0x8   :  { %348 = dma.done.wait [#allocation3], 2048  }
   0x9   :  { %349 = vsyncadd [#allocation3], 4294965248 }
   0xa   :  { %350 = dma.done.wait [#allocation6], 2048  }
   0xb   :  { %351 = vsyncadd [#allocation6], 4294965248  ;;  %v40_v0 = vld [vmem:[#allocation2] sm:$0xff]  ;;  %v41_v1 = vld [vmem:[#allocation2 + $0x8] sm:$0xff]  ;;  %vm230_vm0 = vcmask 1040384   ;;  %vm232_vm1 = vcmask 1042434  }
   0xc   :  { %v42_v2 = vld [vmem:[#allocation2 + $0x10] sm:$0xff]  ;;  %v43_v3 = vld [vmem:[#allocation2 + $0x18] sm:$0xff]  ;;  %v44_v4 = vld [vmem:[#allocation2 + $0x20] sm:$0xff]  ;;  %vm234_vm2 = vcmask 1041408   ;;  %vm236_vm3 = vcmask 1044484   ;;  %vm238_vm4 = vcmask 1046534  }
   0xd   :  { %v45_v5 = vld [vmem:[#allocation2 + $0x28] sm:$0xff]  ;;  %v46_v6 = vld [vmem:[#allocation2 + $0x30] sm:$0xff]  ;;  %v47_v7 = vld [vmem:[#allocation2 + $0x38] sm:$0xff]  ;;  %vm240_vm5 = vcmask 1045508   ;;  %vm242_vm6 = vcmask 1043456   ;;  %s356_s0 = smov [#allocation7]  }
   0xe   :  { %v56_v8 = vld [vmem:[#allocation5] sm:$0xff]  ;;  %v57_v9 = vld [vmem:[#allocation5 + $0x8] sm:$0xff]  ;;  %v58_v10 = vld [vmem:[#allocation5 + $0x10] sm:$0xff]  ;;  %s260_s1 = sshll.u32 %s356_s0, 4  ;;  %s262_s21 = sshll.u32 %s397_s2, 4  ;;  %s261_s1 = int_to_ptr.vmem [resolvable:$true] %s260_s1  ;;  %s263_s21 = int_to_ptr.hbm [resolvable:$true] %s262_s21 }
   0xf   :  { %v59_v11 = vld [vmem:[#allocation5 + $0x18] sm:$0xff]  ;;  %v72_v12 = vsub.f32 %v40_v0, %v56_v8  ;;  %v60_v13 = vld [vmem:[#allocation5 + $0x20] sm:$0xff]  ;;  %v61_v14 = vld [vmem:[#allocation5 + $0x28] sm:$0xff]  ;;  %v73_v16 = vsub.f32 %v41_v1, %v57_v9  ;;  %v74_v17 = vsub.f32 %v42_v2, %v58_v10 }
  0x10   :  { %v62_v15 = vld [vmem:[#allocation5 + $0x30] sm:$0xff]  ;;  %v75_v18 = vsub.f32 %v43_v3, %v59_v11  ;;  %v63_v19 = vld [vmem:[#allocation5 + $0x38] sm:$0xff]  ;;  %v76_v20 = vsub.f32 %v44_v4, %v60_v13  ;;  %v77_v21 = vsub.f32 %v45_v5, %v61_v14  ;;  %v48_v4 = vld [vmem:[#allocation2 + $0x40] sm:$0xff] }
  0x11   :  { %v78_v22 = vsub.f32 %v46_v6, %v62_v15  ;;  %v88_v23 = vmul.f32 %v72_v12, %v72_v12  ;;  %v79_v24 = vsub.f32 %v47_v7, %v63_v19  ;;  %v89_v25 = vmul.f32 %v73_v16, %v73_v16  ;;  %v64_v5 = vld [vmem:[#allocation5 + $0x40] sm:$0xff]  ;;  %v49_v10 = vld [vmem:[#allocation2 + $0x48] sm:$0xff]  ;;  %v50_v11 = vld [vmem:[#allocation2 + $0x50] sm:$0xff] }
  0x12   :  { %v90_v26 = vmul.f32 %v74_v17, %v74_v17  ;;  %v91_v27 = vmul.f32 %v75_v18, %v75_v18  ;;  %v92_v28 = vmul.f32 %v76_v20, %v76_v20  ;;  %v93_v29 = vmul.f32 %v77_v21, %v77_v21  ;;  %v51_v16 = vld [vmem:[#allocation2 + $0x58] sm:$0xff]  ;;  %v52_v17 = vld [vmem:[#allocation2 + $0x60] sm:$0xff]  ;;  %v65_v18 = vld [vmem:[#allocation5 + $0x48] sm:$0xff] }
  0x13   :  { %v94_v30 = vmul.f32 %v78_v22, %v78_v22  ;;  %v104_v31 = vrot.slane %v88_v23, 4  ;;  %v95_v32 = vmul.f32 %v79_v24, %v79_v24  ;;  %v110_v33 = vrot.slane %v89_v25, 4  ;;  %v53_v22 = vld [vmem:[#allocation2 + $0x68] sm:$0xff]  ;;  %v66_v24 = vld [vmem:[#allocation5 + $0x50] sm:$0xff] }
  0x14   :  { %v116_v34 = vrot.slane %v90_v26, 4  ;;  %v122_v35 = vrot.slane %v91_v27, 4  ;;  %v128_v37 = vrot.slane %v92_v28, 4  ;;  %v134_v38 = vrot.slane %v93_v29, 4 }
  0x15   :  { %v105_v36 = vadd.f32 %v104_v31, %v88_v23  ;;  %v140_v39 = vrot.slane %v94_v30, 4  ;;  %v111_v40 = vadd.f32 %v110_v33, %v89_v25  ;;  %v146_v43 = vrot.slane %v95_v32, 4  ;;  %v54_v23 = vld [vmem:[#allocation2 + $0x70] sm:$0xff]  ;;  %v67_v31 = vld [vmem:[#allocation5 + $0x58] sm:$0xff] }
  0x16   :  { %v117_v41 = vadd.f32 %v116_v34, %v90_v26  ;;  %v123_v42 = vadd.f32 %v122_v35, %v91_v27  ;;  %v129_v45 = vadd.f32 %v128_v37, %v92_v28  ;;  %v135_v46 = vadd.f32 %v134_v38, %v93_v29  ;;  %v70_v37 = vld [vmem:[#allocation5 + $0x70] sm:$0xff]  ;;  %v71_v38 = vld [vmem:[#allocation5 + $0x78] sm:$0xff] }
  0x17   :  { %v106_v44 = vrot.slane %v105_v36, 2  ;;  %v141_v47 = vadd.f32 %v140_v39, %v94_v30  ;;  %v112_v48 = vrot.slane %v111_v40, 2  ;;  %v147_v51 = vadd.f32 %v146_v43, %v95_v32  ;;  %v55_v30 = vld [vmem:[#allocation2 + $0x78] sm:$0xff]  ;;  %v68_v32 = vld [vmem:[#allocation5 + $0x60] sm:$0xff] }
  0x18   :  { %v118_v49 = vrot.slane %v117_v41, 2  ;;  %v124_v50 = vrot.slane %v123_v42, 2  ;;  %v130_v53 = vrot.slane %v129_v45, 2  ;;  %v136_v54 = vrot.slane %v135_v46, 2 }
  0x19   :  { %v107_v52 = vadd.f32 %v106_v44, %v105_v36  ;;  %v142_v55 = vrot.slane %v141_v47, 2  ;;  %v113_v56 = vadd.f32 %v112_v48, %v111_v40  ;;  %v148_v59 = vrot.slane %v147_v51, 2  ;;  %v69_v36 = vld [vmem:[#allocation5 + $0x68] sm:$0xff] }
  0x1a   :  { %v119_v57 = vadd.f32 %v118_v49, %v117_v41  ;;  %v125_v58 = vadd.f32 %v124_v50, %v123_v42  ;;  %v131_v61 = vadd.f32 %v130_v53, %v129_v45  ;;  %v137_v62 = vadd.f32 %v136_v54, %v135_v46 }
  0x1b   :  { %v108_v60 = vrot.slane %v107_v52, 1  ;;  %v143_v63 = vadd.f32 %v142_v55, %v141_v47  ;;  %v114_v0 = vrot.slane %v113_v56, 1  ;;  %v149_v3 = vadd.f32 %v148_v59, %v147_v51 }
  0x1c   :  { %v120_v1 = vrot.slane %v119_v57, 1  ;;  %v126_v2 = vrot.slane %v125_v58, 1  ;;  %v132_v7 = vrot.slane %v131_v61, 1  ;;  %v138_v8 = vrot.slane %v137_v62, 1 }
  0x1d   :  { %v109_v6 = vadd.f32 %v108_v60, %v107_v52  ;;  %v144_v9 = vrot.slane %v143_v63, 1  ;;  %v115_v12 = vadd.f32 %v114_v0, %v113_v56  ;;  %v150_v15 = vrot.slane %v149_v3, 1 }
  0x1e   :  { %v121_v13 = vadd.f32 %v120_v1, %v119_v57  ;;  %v127_v14 = vadd.f32 %v126_v2, %v125_v58  ;;  %v133_v19 = vadd.f32 %v132_v7, %v131_v61  ;;  %v139_v20 = vadd.f32 %v138_v8, %v137_v62 }
  0x1f   :  { %v145_v21 = vadd.f32 %v144_v9, %v143_v63  ;;  %v80_v25 = vsub.f32 %v48_v4, %v64_v5  ;;  %v151_v26 = vadd.f32 %v150_v15, %v149_v3  ;;  %v216_v27 = vrot.slane %v115_v12, 7 }
  0x20   :  { %v217_v28 = vrot.slane %v121_v13, 6  ;;  %v218_v29 = vrot.slane %v127_v14, 5  ;;  %v219_v33 = vrot.slane %v133_v19, 4  ;;  %v220_v34 = vrot.slane %v139_v20, 3 }
  0x21   :  { %v221_v35 = vrot.slane %v145_v21, 2  ;;  %v81_v39 = vsub.f32 %v49_v10, %v65_v18  ;;  %v222_v40 = vrot.slane %v151_v26, 1  ;;  %v231_v41 = vsel %vm230_vm0, %v109_v6, %v216_v27 }
  0x22   :  { %v233_v42 = vsel %vm232_vm1, %v217_v28, %v218_v29  ;;  %v82_v43 = vsub.f32 %v50_v11, %v66_v24  ;;  %v237_v45 = vsel %vm236_vm3, %v219_v33, %v220_v34  ;;  %v83_v46 = vsub.f32 %v51_v16, %v67_v31 }
  0x23   :  { %v235_v44 = vsel %vm234_vm2, %v231_v41, %v233_v42  ;;  %v84_v47 = vsub.f32 %v52_v17, %v68_v32  ;;  %v239_v48 = vsel %vm238_vm4, %v221_v35, %v222_v40  ;;  %v85_v49 = vsub.f32 %v53_v22, %v69_v36 }
  0x24   :  { %v86_v50 = vsub.f32 %v54_v23, %v70_v37  ;;  %v87_v51 = vsub.f32 %v55_v30, %v71_v38  ;;  %v241_v52 = vsel %vm240_vm5, %v237_v45, %v239_v48  ;;  %v96_v53 = vmul.f32 %v80_v25, %v80_v25 }
  0x25   :  { %v97_v54 = vmul.f32 %v81_v39, %v81_v39  ;;  %v98_v55 = vmul.f32 %v82_v43, %v82_v43  ;;  %v243_v56 = vsel %vm242_vm6, %v235_v44, %v241_v52  ;;  %v99_v57 = vmul.f32 %v83_v46, %v83_v46 }
  0x26   :  { %v100_v58 = vmul.f32 %v84_v47, %v84_v47  ;;  %v101_v59 = vmul.f32 %v85_v49, %v85_v49  ;;  %253 = vst [vmem:[#allocation7] sm:$0xff] %v243_v56  ;;  %v102_v60 = vmul.f32 %v86_v50, %v86_v50  ;;  %v103_v61 = vmul.f32 %v87_v51, %v87_v51 }
  0x27   :  { %v152_v62 = vrot.slane %v96_v53, 4  ;;  %v158_v63 = vrot.slane %v97_v54, 4  ;;  %v164_v0 = vrot.slane %v98_v55, 4  ;;  %v170_v1 = vrot.slane %v99_v57, 4 }
  0x28   :  { %v176_v2 = vrot.slane %v100_v58, 4  ;;  %v182_v3 = vrot.slane %v101_v59, 4  ;;  %v188_v6 = vrot.slane %v102_v60, 4  ;;  %v194_v7 = vrot.slane %v103_v61, 4 }
  0x29   :  { %v153_v4 = vadd.f32 %v152_v62, %v96_v53  ;;  %v159_v5 = vadd.f32 %v158_v63, %v97_v54  ;;  %v165_v8 = vadd.f32 %v164_v0, %v98_v55  ;;  %v171_v9 = vadd.f32 %v170_v1, %v99_v57 }
  0x2a   :  { %v177_v10 = vadd.f32 %v176_v2, %v100_v58  ;;  %v183_v11 = vadd.f32 %v182_v3, %v101_v59  ;;  %v189_v14 = vadd.f32 %v188_v6, %v102_v60  ;;  %v195_v15 = vadd.f32 %v194_v7, %v103_v61 }
  0x2b   :  { %v154_v12 = vrot.slane %v153_v4, 2  ;;  %v160_v13 = vrot.slane %v159_v5, 2  ;;  %v166_v16 = vrot.slane %v165_v8, 2  ;;  %v172_v17 = vrot.slane %v171_v9, 2 }
  0x2c   :  { %v178_v18 = vrot.slane %v177_v10, 2  ;;  %v184_v19 = vrot.slane %v183_v11, 2  ;;  %v190_v22 = vrot.slane %v189_v14, 2  ;;  %v196_v23 = vrot.slane %v195_v15, 2 }
  0x2d   :  { %v155_v20 = vadd.f32 %v154_v12, %v153_v4  ;;  %v161_v21 = vadd.f32 %v160_v13, %v159_v5  ;;  %v167_v24 = vadd.f32 %v166_v16, %v165_v8  ;;  %v173_v25 = vadd.f32 %v172_v17, %v171_v9 }
  0x2e   :  { %v179_v26 = vadd.f32 %v178_v18, %v177_v10  ;;  %v185_v27 = vadd.f32 %v184_v19, %v183_v11  ;;  %v191_v30 = vadd.f32 %v190_v22, %v189_v14  ;;  %v197_v31 = vadd.f32 %v196_v23, %v195_v15 }
  0x2f   :  { %v156_v28 = vrot.slane %v155_v20, 1  ;;  %v162_v29 = vrot.slane %v161_v21, 1  ;;  %v168_v32 = vrot.slane %v167_v24, 1  ;;  %v174_v33 = vrot.slane %v173_v25, 1 }
  0x30   :  { %v180_v34 = vrot.slane %v179_v26, 1  ;;  %v186_v35 = vrot.slane %v185_v27, 1  ;;  %v192_v38 = vrot.slane %v191_v30, 1  ;;  %v198_v39 = vrot.slane %v197_v31, 1 }
  0x31   :  { %v157_v36 = vadd.f32 %v156_v28, %v155_v20  ;;  %v163_v37 = vadd.f32 %v162_v29, %v161_v21  ;;  %v169_v40 = vadd.f32 %v168_v32, %v167_v24  ;;  %v175_v41 = vadd.f32 %v174_v33, %v173_v25 }
  0x32   :  { %v181_v42 = vadd.f32 %v180_v34, %v179_v26  ;;  %v187_v43 = vadd.f32 %v186_v35, %v185_v27  ;;  %v193_v44 = vadd.f32 %v192_v38, %v191_v30  ;;  %v199_v45 = vadd.f32 %v198_v39, %v197_v31 }
  0x33   :  { %v223_v46 = vrot.slane %v163_v37, 7  ;;  %v224_v47 = vrot.slane %v169_v40, 6  ;;  %v225_v48 = vrot.slane %v175_v41, 5 }
  0x34   :  { %v226_v49 = vrot.slane %v181_v42, 4  ;;  %v227_v50 = vrot.slane %v187_v43, 3  ;;  %v228_v51 = vrot.slane %v193_v44, 2  ;;  %v229_v52 = vrot.slane %v199_v45, 1 }
  0x35   :  { %v244_v53 = vsel %vm230_vm0, %v157_v36, %v223_v46  ;;  %v245_v54 = vsel %vm232_vm1, %v224_v47, %v225_v48 }
  0x36   :  { %v247_v55 = vsel %vm236_vm3, %v226_v49, %v227_v50  ;;  %v246_v56 = vsel %vm234_vm2, %v244_v53, %v245_v54  ;;  %v248_v57 = vsel %vm238_vm4, %v228_v51, %v229_v52 }
  0x37   :  { %v249_v58 = vsel %vm240_vm5, %v247_v55, %v248_v57 }
  0x38   :  { %v250_v59 = vsel %vm242_vm6, %v246_v56, %v249_v58 }
  0x39   :  { %254 = vst [vmem:[#allocation7 + $0x8] sm:$0xff] %v250_v59 }
  0x3a   :  { %265 = dma.vmem_to_hbm [thread:$0]  %s261_s1, 256, %s263_s21, [#allocation4]  }
  0x3b   :  { %352 = dma.done.wait [#allocation4], 256  }
  0x3c   :  { %353 = vsyncadd [#allocation4], 4294967040 }
  0x3d   :  { %270 = vsyncpa [#allocation3], 1 }
  0x3e   :  { %271 = vsyncpa [#allocation6], 1 }
  0x3f   :  { %272 = vsyncpa [#allocation4], 1 }

</bundles_post_ra>
